<compile_context>
chip_gen: v7x
topology: tpu7x:2x2x1
jax: 0.10.0
libtpu: 0.0.40
codegen_flags: <defaults>
</compile_context>

<pallas_src>
import math
from functools import partial

import jax
import jax.numpy as jnp
from jax.experimental import pallas as pl
from jax.experimental.pallas import tpu as pltpu


_GELU_C = math.sqrt(2.0 / math.pi)


def _gelu_new(x):
    # GPT-2 "gelu_new" (tanh approximation), matches HF ACT2FN["gelu_new"].
    # x*x*x (two VPU muls, hidden under MXU) instead of jnp.power -> EUP only does tanh.
    return 0.5 * x * (1.0 + jnp.tanh(_GELU_C * (x + 0.044715 * (x * x * x))))


def _cdiv(a, b):
    return (a + b - 1) // b


def _round_up(v, m):
    return _cdiv(v, m) * m


def _pick_divisor_tile(dim, target, align):
    """Largest multiple of `align` <= target that divides `dim`.
    `dim` is always a multiple of `align` here, so this never falls back to the
    full dimension (guards the VMEM budget on v7x)."""
    t = min(target, dim)
    t = (t // align) * align
    while t > align:
        if dim % t == 0:
            return t
        t -= align
    return align


def _vmem_capacity_bytes():
    """Physical VMEM of the attached TPU; conservative (v7x) fallback."""
    try:
        info = pltpu.get_tpu_info()
        cap = getattr(info, "vmem_capacity_bytes", None)
        if cap:
            return int(cap)
    except Exception:
        pass
    return 64 << 20


def _row_tiling(M, tile_m, min_tiles=2):
    """Sublane-aligned row tile. Prefers >=2 near-equal tiles (so the 'parallel'
    row axis can shard across both v7x TensorCores) and keeps padding to <8
    rows per tile instead of padding up to a full tile."""
    n_tiles = _cdiv(M, max(8, tile_m))
    if M >= 8 * min_tiles:
        n_tiles = max(n_tiles, min_tiles)
    tm = _round_up(_cdiv(M, n_tiles), 8)
    M_pad = _round_up(M, tm)
    return tm, M_pad, M_pad // tm


def _resident_vmem_need(tm, nx, ns, csz, osz):
    return (2 * tm * nx * csz            # x tile (double-buffered)
            + 2 * tm * nx * osz          # out tile
            + 2 * nx * ns * csz          # W_fc (allow double-buffer allocation)
            + 2 * ns * nx * csz          # W_proj
            + 2 * ns * 4 + 2 * nx * 4    # biases (f32)
            + tm * ns * (4 + csz))       # h intermediate (f32) + bf16 copy


def _ktiled_vmem_need(tm, tn, nx, csz, osz):
    return (2 * tm * nx * csz            # x tile
            + 2 * nx * tn * csz          # W_fc column slice
            + 2 * tn * nx * csz          # W_proj row slice
            + 2 * tn * 4 + 2 * nx * 4    # bias tiles (f32)
            + 2 * tm * nx * osz          # out tile
            + tm * nx * 4                # f32 accumulator scratch
            + tm * tn * (4 + csz))       # h intermediate (f32) + bf16 copy


# ---------------------------------------------------------------------------
# Kernels
# ---------------------------------------------------------------------------
def _mlp_resident_kernel(x_ref, w_fc_ref, b_fc_ref, w_proj_ref, b_proj_ref, o_ref):
    # Both weight matrices VMEM-resident: single pass, no accumulator RMW.
    h = jnp.dot(x_ref[...], w_fc_ref[...], preferred_element_type=jnp.float32)
    h = _gelu_new(h + b_fc_ref[...])
    out = jnp.dot(h.astype(w_proj_ref.dtype), w_proj_ref[...],
                  preferred_element_type=jnp.float32)
    # dropout (resid_pdrop) is identity in eval mode.
    o_ref[...] = (out + b_proj_ref[...]).astype(o_ref.dtype)


def _mlp_ktiled_kernel(x_ref, w_fc_ref, b_fc_ref, w_proj_ref, b_proj_ref,
                       o_ref, acc_ref):
    k = pl.program_id(1)  # n_state reduction axis (last grid axis, "arbitrary")

    # h_k = gelu_new(x @ W_fc[:, kslice] + b_fc[kslice]); f32 MXU accumulation,
    # gelu math in f32 (no bf16 VPU/EUP dependence -> portable to v5e).
    h = jnp.dot(x_ref[...], w_fc_ref[...], preferred_element_type=jnp.float32)
    h = _gelu_new(h + b_fc_ref[...])
    part = jnp.dot(h.astype(w_proj_ref.dtype), w_proj_ref[...],
                   preferred_element_type=jnp.float32)

    @pl.when(k == 0)
    def _():
        acc_ref[...] = part          # first step: overwrite (no zero-fill + RMW)

    @pl.when(k > 0)
    def _():
        acc_ref[...] += part

    @pl.when(k == pl.num_programs(1) - 1)
    def _():
        # dropout (resid_pdrop) is identity in eval mode.
        # TODO(synk): training-mode dropout (pltpu.prng_*) not implemented; eval semantics only.
        o_ref[...] = (acc_ref[...] + b_proj_ref[...]).astype(o_ref.dtype)


# ---------------------------------------------------------------------------
# Wrapper
# ---------------------------------------------------------------------------
def mlp_forward(x, w_fc, b_fc, w_proj, b_proj, *,
                tile_m=1024, tile_n=1024, compute_dtype=jnp.bfloat16,
                force_k_tiling=False):
    """GPT-2 MLP: x:(B,S,nx) -> (B,S,nx). Fused FC -> gelu_new -> proj kernel."""
    B, S, nx = x.shape
    n_state = w_fc.shape[1]
    out_dtype = x.dtype
    M = B * S

    # ---- pad n_state to a lane multiple (zero pad => zero contribution) ----
    ns = _round_up(n_state, 128)
    if ns != n_state:
        w_fc = jnp.pad(w_fc, ((0, 0), (0, ns - n_state)))
        b_fc = jnp.pad(b_fc, ((0, ns - n_state),))
        w_proj = jnp.pad(w_proj, ((0, ns - n_state), (0, 0)))

    csz = jnp.dtype(compute_dtype).itemsize
    osz = jnp.dtype(out_dtype).itemsize
    cap = _vmem_capacity_bytes()           # 64 MiB on v7x, 128 MiB on v5e/v6e
    budget = int(cap * 0.8)                # leave compiler scratch / spill headroom

    # ---- row tiling (>=2 tiles so both v7x TCs get work; minimal padding) ---
    tm, M_pad, n_row_tiles = _row_tiling(M, tile_m)

    use_resident = (not force_k_tiling
                    and _resident_vmem_need(tm, nx, ns, csz, osz) <= int(cap * 0.7))

    tn = None
    if not use_resident:
        # n_state reduction slice; shrink tiles until the working set fits.
        tn = _pick_divisor_tile(ns, tile_n, 128)
        while _ktiled_vmem_need(tm, tn, nx, csz, osz) > budget and tn > 128:
            tn = _pick_divisor_tile(ns, max(128, tn // 2), 128)
        while _ktiled_vmem_need(tm, tn, nx, csz, osz) > budget and tm > 8:
            tile_m = max(8, tile_m // 2)
            tm, M_pad, n_row_tiles = _row_tiling(M, tile_m)

    # ---- dtypes: bf16 MXU inputs, f32 biases / accumulation -----------------
    x2d = x.reshape(M, nx).astype(compute_dtype)
    if M_pad != M:
        x2d = jnp.pad(x2d, ((0, M_pad - M), (0, 0)))
    w_fc_c = w_fc.astype(compute_dtype)
    w_proj_c = w_proj.astype(compute_dtype)
    b_fc2d = b_fc.reshape(1, ns).astype(jnp.float32)
    b_proj2d = b_proj.reshape(1, nx).astype(jnp.float32)

    flops = 4 * M_pad * nx * ns            # two matmuls, 2*M*nx*ns each
    transc = M_pad * ns                    # tanh in gelu_new

    if use_resident:
        # Weights read from HBM exactly once per call -> compute-bound path.
        need = _resident_vmem_need(tm, nx, ns, csz, osz)
        vmem_limit = int(min(max(need + (8 << 20), 32 << 20), budget))
        cost = pl.CostEstimate(
            flops=flops, transcendentals=transc,
            bytes_accessed=(x2d.size * csz + w_fc_c.size * csz + w_proj_c.size * csz
                            + b_fc2d.size * 4 + b_proj2d.size * 4 + M_pad * nx * osz))
        out2d = pl.pallas_call(
            _mlp_resident_kernel,
            out_shape=jax.ShapeDtypeStruct((M_pad, nx), out_dtype),
            grid_spec=pltpu.PrefetchScalarGridSpec(
                num_scalar_prefetch=0,
                grid=(n_row_tiles,),
                in_specs=[
                    pl.BlockSpec((tm, nx), lambda i: (i, 0)),   # x rows
                    pl.BlockSpec((nx, ns), lambda i: (0, 0)),   # W_fc (resident)
                    pl.BlockSpec((1, ns), lambda i: (0, 0)),    # b_fc
                    pl.BlockSpec((ns, nx), lambda i: (0, 0)),   # W_proj (resident)
                    pl.BlockSpec((1, nx), lambda i: (0, 0)),    # b_proj
                ],
                out_specs=pl.BlockSpec((tm, nx), lambda i: (i, 0)),
            ),
            compiler_params=pltpu.CompilerParams(
                dimension_semantics=("parallel",),
                vmem_limit_bytes=vmem_limit),
            cost_estimate=cost,
        )(x2d, w_fc_c, b_fc2d, w_proj_c, b_proj2d)
    else:
        need = _ktiled_vmem_need(tm, tn, nx, csz, osz)
        vmem_limit = int(min(max(need + (8 << 20), 32 << 20), budget))
        cost = pl.CostEstimate(
            flops=flops, transcendentals=transc,
            # weights/biases are re-streamed once per row tile
            bytes_accessed=(x2d.size * csz
                            + n_row_tiles * (w_fc_c.size * csz + w_proj_c.size * csz
                                             + b_fc2d.size * 4 + b_proj2d.size * 4)
                            + M_pad * nx * osz))
        out2d = pl.pallas_call(
            _mlp_ktiled_kernel,
            out_shape=jax.ShapeDtypeStruct((M_pad, nx), out_dtype),
            grid_spec=pltpu.PrefetchScalarGridSpec(
                num_scalar_prefetch=0,
                grid=(n_row_tiles, ns // tn),   # rows (parallel), n_state (reduction, last)
                in_specs=[
                    pl.BlockSpec((tm, nx), lambda i, k: (i, 0)),   # x rows (resident over k)
                    pl.BlockSpec((nx, tn), lambda i, k: (0, k)),   # W_fc column slice
                    pl.BlockSpec((1, tn), lambda i, k: (0, k)),    # b_fc slice
                    pl.BlockSpec((tn, nx), lambda i, k: (k, 0)),   # W_proj row slice
                    pl.BlockSpec((1, nx), lambda i, k: (0, 0)),    # b_proj (full)
                ],
                out_specs=pl.BlockSpec((tm, nx), lambda i, k: (i, 0)),  # lane-dense output
                scratch_shapes=[pltpu.VMEM((tm, nx), jnp.float32)],     # f32 accumulator
            ),
            compiler_params=pltpu.CompilerParams(
                dimension_semantics=("parallel", "arbitrary"),
                vmem_limit_bytes=vmem_limit),
            cost_estimate=cost,
        )(x2d, w_fc_c, b_fc2d, w_proj_c, b_proj2d)

    return out2d[:M].reshape(B, S, nx)


if __name__ == "__main__":
    # Small but lane-dense shapes: n_embd=128 (multiple of 128), n_state=4*n_embd
    batch, seq, n_embd = 2, 8, 128
    n_state = 4 * n_embd

    key = jax.random.PRNGKey(0)
    kx, kw1, kw2 = jax.random.split(key, 3)

    x = jax.random.normal(kx, (batch, seq, n_embd), dtype=jnp.float32)
    # Conv1D init: weight ~ N(0, 0.02), bias = 0
    w_fc = 0.02 * jax.random.normal(kw1, (n_embd, n_state), dtype=jnp.float32)
    b_fc = jnp.zeros((n_state,), dtype=jnp.float32)
    w_proj = 0.02 * jax.random.normal(kw2, (n_state, n_embd), dtype=jnp.float32)
    b_proj = jnp.zeros((n_embd,), dtype=jnp.float32)

    # f32 reference (kernel uses bf16 matmul inputs with f32 accumulation ->
    # expect ~1e-3..1e-2 level diffs; tolerance loosened accordingly)
    h_ref = _gelu_new(x.reshape(-1, n_embd) @ w_fc + b_fc)
    ref = (h_ref @ w_proj + b_proj).reshape(batch, seq, n_embd)

    # Path 1: weight-resident (auto-selected at these widths)
    out = jax.block_until_ready(jax.jit(mlp_forward)(x, w_fc, b_fc, w_proj, b_proj))
    assert jnp.allclose(out, ref, atol=1e-2, rtol=1e-2), "resident path mismatch"

    # Path 2: force the k-tiled (n_state reduction) path with multiple k steps
    f_kt = jax.jit(partial(mlp_forward, force_k_tiling=True, tile_m=8, tile_n=128))
    out_kt = jax.block_until_ready(f_kt(x, w_fc, b_fc, w_proj, b_proj))
    assert jnp.allclose(out_kt, ref, atol=1e-2, rtol=1e-2), "k-tiled path mismatch"

    print("KERNEL_OK")
</pallas_src>

<mosaic_0001>
module attributes {stable_mosaic.version = 11 : i64} {
  func.func @_mlp_resident_kernel(%arg0: i32, %arg1: memref<8x128xbf16, #tpu.memory_space<vmem>>, %arg2: memref<128x512xbf16, #tpu.memory_space<vmem>>, %arg3: memref<1x512xf32, #tpu.memory_space<vmem>>, %arg4: memref<512x128xbf16, #tpu.memory_space<vmem>>, %arg5: memref<1x128xf32, #tpu.memory_space<vmem>>, %arg6: memref<8x128xf32, #tpu.memory_space<vmem>>) attributes {dimension_semantics = [#tpu.dimension_semantics<parallel>], iteration_bounds = array<i64: 2>, scalar_prefetch = 0 : i64, scratch_operands = 0 : i64, tpu.core_type = #tpu.core_type<tc>, window_params = [{transform_indices = @transform_0, window_bounds = array<i64: 8, 128>}, {pipeline_mode = #tpu.pipeline_mode<synchronous>, transform_indices = @transform_1, window_bounds = array<i64: 128, 512>}, {pipeline_mode = #tpu.pipeline_mode<synchronous>, transform_indices = @transform_2, window_bounds = array<i64: 1, 512>}, {pipeline_mode = #tpu.pipeline_mode<synchronous>, transform_indices = @transform_3, window_bounds = array<i64: 512, 128>}, {pipeline_mode = #tpu.pipeline_mode<synchronous>, transform_indices = @transform_4, window_bounds = array<i64: 1, 128>}, {transform_indices = @transform_5, window_bounds = array<i64: 8, 128>}]} {
    %c0 = arith.constant 0 : index
    %c0_0 = arith.constant 0 : index
    %0 = vector.load %arg1[%c0, %c0_0] : memref<8x128xbf16, #tpu.memory_space<vmem>>, vector<8x128xbf16>
    %c0_1 = arith.constant 0 : index
    %c0_2 = arith.constant 0 : index
    %1 = vector.load %arg2[%c0_1, %c0_2] : memref<128x512xbf16, #tpu.memory_space<vmem>>, vector<128x512xbf16>
    %cst = arith.constant dense<0.000000e+00> : vector<8x512xf32>
    %2 = tpu.matmul %0, %1, %cst {dimension_numbers = #tpu.dot_dimension_numbers<[1], [0], [0], [1], [0, 0, 1, 1], [], []>} : vector<8x128xbf16>, vector<128x512xbf16>, vector<8x512xf32> -> vector<8x512xf32>
    %c0_3 = arith.constant 0 : index
    %c0_4 = arith.constant 0 : index
    %3 = vector.load %arg3[%c0_3, %c0_4] : memref<1x512xf32, #tpu.memory_space<vmem>>, vector<1x512xf32>
    %4 = vector.broadcast %3 : vector<1x512xf32> to vector<8x512xf32>
    %5 = arith.addf %2, %4 : vector<8x512xf32>
    %cst_5 = arith.constant 5.000000e-01 : f32
    %6 = vector.broadcast %cst_5 : f32 to vector<8x512xf32>
    %7 = arith.mulf %6, %5 : vector<8x512xf32>
    %8 = arith.mulf %5, %5 : vector<8x512xf32>
    %9 = arith.mulf %8, %5 : vector<8x512xf32>
    %cst_6 = arith.constant 4.471500e-02 : f32
    %10 = vector.broadcast %cst_6 : f32 to vector<8x512xf32>
    %11 = arith.mulf %10, %9 : vector<8x512xf32>
    %12 = arith.addf %5, %11 : vector<8x512xf32>
    %cst_7 = arith.constant 0.797884583 : f32
    %13 = vector.broadcast %cst_7 : f32 to vector<8x512xf32>
    %14 = arith.mulf %13, %12 : vector<8x512xf32>
    %15 = math.tanh %14 : vector<8x512xf32>
    %cst_8 = arith.constant 1.000000e+00 : f32
    %16 = vector.broadcast %cst_8 : f32 to vector<8x512xf32>
    %17 = arith.addf %16, %15 : vector<8x512xf32>
    %18 = arith.mulf %7, %17 : vector<8x512xf32>
    %19 = arith.truncf %18 : vector<8x512xf32> to vector<8x512xbf16>
    %c0_9 = arith.constant 0 : index
    %c0_10 = arith.constant 0 : index
    %20 = vector.load %arg4[%c0_9, %c0_10] : memref<512x128xbf16, #tpu.memory_space<vmem>>, vector<512x128xbf16>
    %cst_11 = arith.constant dense<0.000000e+00> : vector<8x128xf32>
    %21 = tpu.matmul %19, %20, %cst_11 {dimension_numbers = #tpu.dot_dimension_numbers<[1], [0], [0], [1], [0, 0, 1, 1], [], []>} : vector<8x512xbf16>, vector<512x128xbf16>, vector<8x128xf32> -> vector<8x128xf32>
    %c0_12 = arith.constant 0 : index
    %c0_13 = arith.constant 0 : index
    %22 = vector.load %arg5[%c0_12, %c0_13] : memref<1x128xf32, #tpu.memory_space<vmem>>, vector<1x128xf32>
    %23 = vector.broadcast %22 : vector<1x128xf32> to vector<8x128xf32>
    %24 = arith.addf %21, %23 : vector<8x128xf32>
    %c0_14 = arith.constant 0 : index
    %c0_15 = arith.constant 0 : index
    %25 = vector.load %arg6[%c0_14, %c0_15] : memref<8x128xf32, #tpu.memory_space<vmem>>, vector<8x128xf32>
    tpu.vector_store %arg6[%c0_14, %c0_15], %24 {strides = array<i32>} : memref<8x128xf32, #tpu.memory_space<vmem>>, vector<8x128xf32>,
    return
  }
  func.func @transform_0(%arg0: i32) -> (i32, i32) {
    %c0_i32 = arith.constant 0 : i32
    %c0_i32_0 = arith.constant 0 : i32
    return %arg0, %c0_i32 : i32, i32
  }
  func.func @transform_1(%arg0: i32) -> (i32, i32) {
    %c0_i32 = arith.constant 0 : i32
    %c0_i32_0 = arith.constant 0 : i32
    %c0_i32_1 = arith.constant 0 : i32
    return %c0_i32, %c0_i32_0 : i32, i32
  }
  func.func @transform_2(%arg0: i32) -> (i32, i32) {
    %c0_i32 = arith.constant 0 : i32
    %c0_i32_0 = arith.constant 0 : i32
    %c0_i32_1 = arith.constant 0 : i32
    return %c0_i32, %c0_i32_0 : i32, i32
  }
  func.func @transform_3(%arg0: i32) -> (i32, i32) {
    %c0_i32 = arith.constant 0 : i32
    %c0_i32_0 = arith.constant 0 : i32
    %c0_i32_1 = arith.constant 0 : i32
    return %c0_i32, %c0_i32_0 : i32, i32
  }
  func.func @transform_4(%arg0: i32) -> (i32, i32) {
    %c0_i32 = arith.constant 0 : i32
    %c0_i32_0 = arith.constant 0 : i32
    %c0_i32_1 = arith.constant 0 : i32
    return %c0_i32, %c0_i32_0 : i32, i32
  }
  func.func @transform_5(%arg0: i32) -> (i32, i32) {
    %c0_i32 = arith.constant 0 : i32
    %c0_i32_0 = arith.constant 0 : i32
    return %arg0, %c0_i32 : i32, i32
  }
}

</mosaic_0001>

<bundles_post_ra>
// kernel: mlp_forward.1
= control target key start
LH: loop header
LB: loop body
LE: loop exit
PB: predicated region body
PF: predicated region fallthrough
CT: control target
= control target key end

     0   :  { %10 = vsyncpa [#allocation3], 0  ;;  %s1616_s0 = inlined_call_operand.vmem [shape: bf16[16,128], index: 0, kind: input, shape index: {}]   ;;  %s1617_s1 = inlined_call_operand.vmem [shape: bf16[128,512], index: 1, kind: input, shape index: {}]   ;;  %s1618_s2 = inlined_call_operand.vmem [shape: f32[1,512], index: 2, kind: input, shape index: {}]   ;;  %s1619_s3 = inlined_call_operand.vmem [shape: bf16[512,128], index: 3, kind: input, shape index: {}]   ;;  %s1620_s4 = inlined_call_operand.vmem [shape: f32[1,128], index: 4, kind: input, shape index: {}]   ;;  %s1621_s5 = inlined_call_operand.hbm [shape: f32[16,128], index: 5, kind: output, shape index: {}]  }
   0x1   :  { %12 = vsyncpa [#allocation3 + $0x1], 0  ;;  %s1318_s18 = smov 0   ;;  %s1320_s19 = smov 0  }
   0x2   :  { %s1322_s20 = smov 0   ;;  %s1324_s21 = smov 0  }
   0x3 LB: > { %s1339_s22 = sadd.s32 4294967295, %s1284_s21   ;;  %s975_s23 = sadd.s32 4294967294, %s1284_s21   ;;  %s1284_s21 = sphi %s1324_s21, %s1627_s21   ;;  %s1280_s20 = sphi %s1322_s20, %s1626_s20   ;;  %s1276_s19 = sphi %s1320_s19, %s1625_s19   ;;  %s1272_s18 = sphi %s1318_s18, %s1624_s18  }
   0x4   : > { %s1343_s24 = sadd.s32 1, %s1284_s21   ;;  %s135_s25 = sadd.s32 1, %s1280_s20 }
   0x5   : > { %s132_s26 = ssub.s32 %s1284_s21, %s1343_s24  ;;  %p145_p0 = scmp.ne.s32.totalorder %s1280_s20, %s1276_s19 }
   0x6   : > { %p133_p1 = scmp.eq.s32.totalorder %s132_s26, 0  ;;  %p146_p2 = scmp.eq.s32.totalorder %s1339_s22, 1 }
   0x7   : > { %p151_p3 = scmp.ne.s32.totalorder %s1276_s19, %s1272_s18  ;;  %p152_p4 = scmp.eq.s32.totalorder %s975_s23, 1 }
   0x8   : > { %s1354_s27 = scalar_select %p133_p1, %s1280_s20, %s135_s25  }
   0x9   : > { %p1356_p5 = por %p146_p2, %p145_p0  ;;  %p1360_p6 = por %p152_p4, %p151_p3 }
   0xa   : > { %p978_p7 = scmp.ge.s32.totalorder %s1284_s21, 1  ;;  %p189_p8 = scmp.lt.s32.totalorder %s1284_s21, 3 }
   0xc   : > { %p190_p9 = pnand %p978_p7, %p189_p8 }
   0xd   : > { %v1134_v0 = vld [vmem:[%s1617_s1 + $0x4] ss:$16 sps:$4 sm:$0xff] (!%p190_p9)   ;;  %v1136_v1 = vld [vmem:[%s1617_s1 + $0xc] ss:$16 sps:$4 sm:$0xff] (!%p190_p9)   ;;  %v1286_v2 = vmov (!%p190_p9), 0   ;;  %p216_p10 = scmp.lt.s32.totalorder (!%p190_p9), %s1339_s22, 1 }
   0xe   : > { %193 = sbr.rel (%p190_p9) target bundleno = 524 (0x20c), region = 40  ;;  %468 = vmatprep.mubr.bf16.mxu0 (!%p190_p9), %v1286_v2  ;;  %509 = vmatprep.mubr.bf16.mxu1 (!%p190_p9), %v1286_v2  ;;  %v1138_v3 = vld [vmem:[%s1617_s1] ss:$16 sps:$4 sm:$0xff] (!%p190_p9)   ;;  %v1139_v4 = vld [vmem:[%s1617_s1 + $0x8] ss:$16 sps:$4 sm:$0xff] (!%p190_p9)   ;;  %v256_v2 = vlaneseq (!%p190_p9)  ;;  %s213_s13 = sand.u32 (!%p190_p9), 1, %s1276_s19  }
   0xf   : > { %436 = vmatprep.subr.bf16.mxu0 (!%p190_p9), %v1134_v0  ;;  %477 = vmatprep.subr.bf16.mxu1 (!%p190_p9), %v1136_v1  ;;  %v1140_v5 = vld [vmem:[%s1617_s1 + $0x24] ss:$16 sps:$4 sm:$0xff] (!%p190_p9)   ;;  %v1142_v6 = vld [vmem:[%s1617_s1 + $0x2c] ss:$16 sps:$4 sm:$0xff] (!%p190_p9)   ;;  %v1144_v7 = vld [vmem:[%s1617_s1 + $0x20] ss:$16 sps:$4 sm:$0xff] (!%p190_p9)  }
  0x10   : > { %437 = vmatpush1.bf16.msra.mxu0 (!%p190_p9), %v1138_v3  ;;  %478 = vmatpush1.bf16.msra.mxu1 (!%p190_p9), %v1139_v4  ;;  %v1145_v8 = vld [vmem:[%s1617_s1 + $0x28] ss:$16 sps:$4 sm:$0xff] (!%p190_p9)   ;;  %v1146_v9 = vld [vmem:[%s1617_s1 + $0x44] ss:$16 sps:$4 sm:$0xff] (!%p190_p9)   ;;  %v1148_v10 = vld [vmem:[%s1617_s1 + $0x4c] ss:$16 sps:$4 sm:$0xff] (!%p190_p9)  }
  0x11   : > { %438 = vmatprep.subr.bf16.mxu0 (!%p190_p9), %v1140_v5  ;;  %479 = vmatprep.subr.bf16.mxu1 (!%p190_p9), %v1142_v6  ;;  %v1150_v11 = vld [vmem:[%s1617_s1 + $0x40] ss:$16 sps:$4 sm:$0xff] (!%p190_p9)   ;;  %v1151_v12 = vld [vmem:[%s1617_s1 + $0x48] ss:$16 sps:$4 sm:$0xff] (!%p190_p9)   ;;  %v1152_v13 = vld [vmem:[%s1617_s1 + $0x64] ss:$16 sps:$4 sm:$0xff] (!%p190_p9)  }
  0x12   : > { %v1154_v14 = vld [vmem:[%s1617_s1 + $0x6c] ss:$16 sps:$4 sm:$0xff] (!%p190_p9)   ;;  %v1156_v15 = vld [vmem:[%s1617_s1 + $0x60] ss:$16 sps:$4 sm:$0xff] (!%p190_p9)   ;;  %v1157_v16 = vld [vmem:[%s1617_s1 + $0x68] ss:$16 sps:$4 sm:$0xff] (!%p190_p9)  }
  0x13   : > { %v1158_v17 = vld [vmem:[%s1617_s1 + $0x84] ss:$16 sps:$4 sm:$0xff] (!%p190_p9)   ;;  %v1160_v18 = vld [vmem:[%s1617_s1 + $0x8c] ss:$16 sps:$4 sm:$0xff] (!%p190_p9)   ;;  %v1162_v19 = vld [vmem:[%s1617_s1 + $0x80] ss:$16 sps:$4 sm:$0xff] (!%p190_p9)  }
  0x14   : > { %439 = vmatpush1.bf16.msra.mxu0 (!%p190_p9), %v1144_v7  ;;  %480 = vmatpush1.bf16.msra.mxu1 (!%p190_p9), %v1145_v8  ;;  %v1163_v20 = vld [vmem:[%s1617_s1 + $0x88] ss:$16 sps:$4 sm:$0xff] (!%p190_p9)   ;;  %v1164_v21 = vld [vmem:[%s1617_s1 + $0xa4] ss:$16 sps:$4 sm:$0xff] (!%p190_p9)   ;;  %v1166_v22 = vld [vmem:[%s1617_s1 + $0xac] ss:$16 sps:$4 sm:$0xff] (!%p190_p9)  }
  0x15   : > { %440 = vmatprep.subr.bf16.mxu0 %v1146_v9  ;;  %481 = vmatprep.subr.bf16.mxu1 %v1148_v10  ;;  %s217_s17 = scalar_select %p216_p10, %s1339_s22, 1  ;;  %v1168_v23 = vld [vmem:[%s1617_s1 + $0xa0] ss:$16 sps:$4 sm:$0xff]   ;;  %v1169_v24 = vld [vmem:[%s1617_s1 + $0xa8] ss:$16 sps:$4 sm:$0xff]   ;;  %v257_v3 = vshrl.u32 %v256_v2, 7 }
  0x16   : > { %v1170_v25 = vld [vmem:[%s1617_s1 + $0xc4] ss:$16 sps:$4 sm:$0xff]   ;;  %v1172_v26 = vld [vmem:[%s1617_s1 + $0xcc] ss:$16 sps:$4 sm:$0xff]   ;;  %v1174_v27 = vld [vmem:[%s1617_s1 + $0xc0] ss:$16 sps:$4 sm:$0xff]  }
  0x17   : > { %s980_s10 = sshll.u32 %s217_s17, 2  ;;  %v1175_v28 = vld [vmem:[%s1617_s1 + $0xc8] ss:$16 sps:$4 sm:$0xff]   ;;  %v1176_v29 = vld [vmem:[%s1617_s1 + $0xe4] ss:$16 sps:$4 sm:$0xff]   ;;  %v258_v4 = vsub.s32 0, %v257_v3 }
  0x18   : > { %441 = vmatpush1.bf16.msra.mxu0 %v1150_v11  ;;  %482 = vmatpush1.bf16.msra.mxu1 %v1151_v12  ;;  %v1178_v30 = vld [vmem:[%s1617_s1 + $0xec] ss:$16 sps:$4 sm:$0xff]   ;;  %v1180_v31 = vld [vmem:[%s1617_s1 + $0xe0] ss:$16 sps:$4 sm:$0xff]   ;;  %v1181_v32 = vld [vmem:[%s1617_s1 + $0xe8] ss:$16 sps:$4 sm:$0xff]   ;;  %s219_s9 = scalar_lea.vmem %s1616_s0, %s980_s10 }
  0x19   : > { %442 = vmatprep.subr.bf16.mxu0 %v1152_v13  ;;  %483 = vmatprep.subr.bf16.mxu1 %v1154_v14  ;;  %v221_v33 = vld [vmem:[%s219_s9] sm:$0xf]  ;;  %v1186_v38 = vld [vmem:[%s1619_s3 + $0x48] sm:$0xff]   ;;  %v1190_v42 = vld [vmem:[%s1619_s3 + $0x50] sm:$0xff]   ;;  %v266_v5 = vsub.s32 2, %v257_v3  ;;  %v262_v7 = vsub.s32 1, %v257_v3 }
  0x1a   : > { %v1182_v34 = vld [vmem:[%s1619_s3 + $0x40] sm:$0xff]   ;;  %v1187_v39 = vld [vmem:[%s1619_s3 + $0xc8] sm:$0xff]   ;;  %v1191_v43 = vld [vmem:[%s1619_s3 + $0xd0] sm:$0xff]   ;;  %v270_v8 = vsub.s32 3, %v257_v3  ;;  %s979_s14 = sshll.u32 %s213_s13, 3  ;;  %s1047_s10 = sshll.u32 %s1339_s22, 7 }
  0x1b   : > { %v1183_v35 = vld [vmem:[%s1619_s3 + $0xc0] sm:$0xff]   ;;  %v1188_v40 = vld [vmem:[%s1619_s3 + $0x8] sm:$0xff]   ;;  %v1192_v44 = vld [vmem:[%s1619_s3 + $0x10] sm:$0xff]   ;;  %s215_s23 = scalar_lea.vmem [#allocation2], %s979_s14  ;;  %s1574_s30 = scalar_lea.hbm %s1621_s5, %s1047_s10 }
  0x1c   : > { %443 = vmatpush1.bf16.msra.mxu0 %v1156_v15  ;;  %484 = vmatpush1.bf16.msra.mxu1 %v1157_v16  ;;  %v1184_v36 = vld [vmem:[%s1619_s3] sm:$0xff]   ;;  %v1189_v41 = vld [vmem:[%s1619_s3 + $0x88] sm:$0xff]   ;;  %v1193_v45 = vld [vmem:[%s1619_s3 + $0x90] sm:$0xff]   ;;  %s916_s25 = sshll.u32 %s215_s23, 4  ;;  %s903_s6 = scalar_lea.sflag [#allocation3], %s213_s13  ;;  %s1576_s25 = int_to_ptr.vmem [resolvable:$true] %s916_s25 }
  0x1d   : > { %444 = vmatprep.subr.bf16.mxu0 %v1158_v17  ;;  %485 = vmatprep.subr.bf16.mxu1 %v1160_v18  ;;  %v1185_v37 = vld [vmem:[%s1619_s3 + $0x80] sm:$0xff]   ;;  %v1194_v46 = vld [vmem:[%s1619_s3 + $0x58] sm:$0xff]   ;;  %v1202_v54 = vld [vmem:[%s1619_s3 + $0x68] sm:$0xff]   ;;  %s1222_s7 = scalar_lea.vmem %s1576_s25, 128  ;;  %s1287_s22 = smov [#allocation2]  }
  0x1e   : > { %v1195_v47 = vld [vmem:[%s1619_s3 + $0xd8] sm:$0xff]   ;;  %v1198_v50 = vld [vmem:[%s1619_s3 + $0x60] sm:$0xff]   ;;  %v1203_v55 = vld [vmem:[%s1619_s3 + $0xe8] sm:$0xff]   ;;  %p1223_p11 = scmp.ne.s32.totalorder %s1576_s25, %s1222_s7  ;;  %s1226_s8 = sshll.u32 %s1287_s22, 4  ;;  %s1227_s8 = int_to_ptr.vmem [resolvable:$false] %s1226_s8 }
  0x1f   : > { %v1196_v48 = vld [vmem:[%s1619_s3 + $0x18] sm:$0xff]   ;;  %v1199_v51 = vld [vmem:[%s1619_s3 + $0xe0] sm:$0xff]   ;;  %v1204_v56 = vld [vmem:[%s1619_s3 + $0x28] sm:$0xff]   ;;  %s1228_s9 = scalar_lea.vmem %s1227_s8, 256  ;;  %p1229_p0 = scmp.lt.s32.totalorder %s1576_s25, %s1227_s8 }
  0x20   : > { %445 = vmatpush1.bf16.msra.mxu0 %v1162_v19  ;;  %486 = vmatpush1.bf16.msra.mxu1 %v1163_v20  ;;  %v1197_v49 = vld [vmem:[%s1619_s3 + $0x98] sm:$0xff]   ;;  %v1200_v52 = vld [vmem:[%s1619_s3 + $0x20] sm:$0xff]   ;;  %v1205_v57 = vld [vmem:[%s1619_s3 + $0xa8] sm:$0xff]   ;;  %p1224_p12 = pnand %p1223_p11, %p1356_p5  ;;  %p1230_p1 = scmp.lt.s32.totalorder %s1228_s9, %s1222_s7 }
  0x21   : > { %446 = vmatprep.subr.bf16.mxu0 %v1164_v21  ;;  %487 = vmatprep.subr.bf16.mxu1 %v1166_v22  ;;  %v1201_v53 = vld [vmem:[%s1619_s3 + $0xa0] sm:$0xff]   ;;  %v1206_v58 = vld [vmem:[%s1619_s3 + $0x70] sm:$0xff]   ;;  %v1210_v62 = vld [vmem:[%s1619_s3 + $0x78] sm:$0xff]  }
  0x22   : > { %v1207_v59 = vld [vmem:[%s1619_s3 + $0xf0] sm:$0xff]   ;;  %v1211_v63 = vld [vmem:[%s1619_s3 + $0xf8] sm:$0xff]   ;;  %v254_v6 = vld [vmem:[%s1618_s2] sm:$0xf]  ;;  %p1225_p13 = pneg %p1224_p12  ;;  %p1231_p2 = por %p1230_p1, %p1229_p0 }
  0x23   : > { %v1208_v60 = vld [vmem:[%s1619_s3 + $0x30] sm:$0xff]   ;;  %v1212_v0 = vld [vmem:[%s1619_s3 + $0x38] sm:$0xff]   ;;  %v259_v9 = vrot.slane %v254_v6, %v258_v4  ;;  %v267_v10 = vrot.slane %v254_v6, %v266_v5  ;;  %v263_v11 = vrot.slane %v254_v6, %v262_v7  ;;  %v271_v12 = vrot.slane %v254_v6, %v270_v8  ;;  %v1013_v3 = vld [vmem:[%s1620_s4] ss:$0 sm:$0xff] }
  0x24   : > { %447 = vmatpush1.bf16.msra.mxu0 %v1168_v23  ;;  %488 = vmatpush1.bf16.msra.mxu1 %v1169_v24  ;;  %v1209_v61 = vld [vmem:[%s1619_s3 + $0xb0] sm:$0xff]   ;;  %v1213_v1 = vld [vmem:[%s1619_s3 + $0xb8] sm:$0xff]   ;;  %p1232_p3 = pnand %p1231_p2, %p1225_p13 }
  0x25   : > { %448 = vmatprep.subr.bf16.mxu0 %v1170_v25  ;;  %489 = vmatprep.subr.bf16.mxu1 %v1172_v26 }
  0x28   : > { %449 = vmatpush1.bf16.msra.mxu0 %v1174_v27  ;;  %490 = vmatpush1.bf16.msra.mxu1 %v1175_v28 }
  0x29   : > { %450 = vmatprep.subr.bf16.mxu0 %v1176_v29  ;;  %491 = vmatprep.subr.bf16.mxu1 %v1178_v30 }
  0x2c   : > { %451 = vmatpush1.bf16.msra.mxu0 %v1180_v31  ;;  %492 = vmatpush1.bf16.msra.mxu1 %v1181_v32 }
  0x2d   : > { %1050 = vmatprep.subr.bf16.mxu0 %v1182_v34  ;;  %1072 = vmatprep.subr.bf16.mxu1 %v1183_v35 }
  0x2f   : > { %469 = vmatmul.mubr.bf16.vlgmr.msra.gmra.mrb[0].mxu0 %v221_v33  ;;  %510 = vmatmul.mubr.bf16.vlgmr.msra.gmra.mrb[0].mxu1 %v221_v33 }
  0x30   : > { %1051 = vmatpush3.bf16.msra.mxu0 %v1184_v36  ;;  %1073 = vmatpush3.bf16.msra.mxu1 %v1185_v37 }
  0x31   : > { %1052 = vmatprep.subr.bf16.mxu0 %v1186_v38  ;;  %1074 = vmatprep.subr.bf16.mxu1 %v1187_v39 }
  0x34   : > { %1053 = vmatpush3.bf16.msra.mxu0 %v1188_v40  ;;  %1075 = vmatpush3.bf16.msra.mxu1 %v1189_v41 }
  0x35   : > { %1054 = vmatprep.subr.bf16.mxu0 %v1190_v42  ;;  %1076 = vmatprep.subr.bf16.mxu1 %v1191_v43 }
  0x38   : > { %1055 = vmatpush3.bf16.msra.mxu0 %v1192_v44  ;;  %1077 = vmatpush3.bf16.msra.mxu1 %v1193_v45 }
  0x39   : > { %1056 = vmatprep.subr.bf16.mxu0 %v1194_v46  ;;  %1078 = vmatprep.subr.bf16.mxu1 %v1195_v47 }
  0x3c   : > { %1057 = vmatpush3.bf16.msra.mxu0 %v1196_v48  ;;  %1079 = vmatpush3.bf16.msra.mxu1 %v1197_v49 }
  0x3d   : > { %1058 = vmatprep.subr.bf16.mxu0 %v1198_v50  ;;  %1080 = vmatprep.subr.bf16.mxu1 %v1199_v51 }
  0x40   : > { %1059 = vmatpush3.bf16.msra.mxu0 %v1200_v52  ;;  %1081 = vmatpush3.bf16.msra.mxu1 %v1201_v53 }
  0x41   : > { %1060 = vmatprep.subr.bf16.mxu0 %v1202_v54  ;;  %1082 = vmatprep.subr.bf16.mxu1 %v1203_v55 }
  0x44   : > { %1061 = vmatpush3.bf16.msra.mxu0 %v1204_v56  ;;  %1083 = vmatpush3.bf16.msra.mxu1 %v1205_v57 }
  0x45   : > { %1062 = vmatprep.subr.bf16.mxu0 %v1206_v58  ;;  %1084 = vmatprep.subr.bf16.mxu1 %v1207_v59 }
  0x48   : > { %1063 = vmatpush3.bf16.msra.mxu0 %v1208_v60  ;;  %1085 = vmatpush3.bf16.msra.mxu1 %v1209_v61 }
  0x49   : > { %1064 = vmatprep.subr.bf16.mxu0 %v1210_v62  ;;  %1086 = vmatprep.subr.bf16.mxu1 %v1211_v63 }
  0x4c   : > { %1065 = vmatpush3.bf16.msra.mxu0 %v1212_v0  ;;  %1087 = vmatpush3.bf16.msra.mxu1 %v1213_v1 }
 0x102   : > { %v470_v13 = vpop.f32.mrb[0].mxu0  ;;  %v511_v14 = vpop.f32.mrb[0].mxu1 }
 0x103   : > { %v471_v15 = vadd.f32 %v470_v13, %v259_v9  ;;  %v512_v16 = vadd.f32 %v511_v14, %v267_v10  ;;  %v472_v17 = vpop.f32.mrb[1].mxu0  ;;  %v513_v18 = vpop.f32.mrb[1].mxu1 }
 0x104   : > { %v473_v19 = vadd.f32 %v472_v17, %v263_v11  ;;  %v514_v20 = vadd.f32 %v513_v18, %v271_v12  ;;  %v474_v21 = vpop.f32.mrb[2].mxu0  ;;  %v515_v22 = vpop.f32.mrb[2].mxu1 }
 0x105   : > { %v522_v23 = vmul.f32 %v471_v15, %v471_v15  ;;  %v524_v24 = vmul.f32 %v512_v16, %v512_v16  ;;  %v475_v25 = vpop.f32.mrb[3].mxu0  ;;  %v516_v26 = vpop.f32.mrb[3].mxu1  ;;  %v518_v49 = vmul.f32 0.5, %v471_v15  ;;  %v520_v52 = vmul.f32 0.5, %v512_v16 }
 0x106   : > { %v523_v27 = vmul.f32 %v473_v19, %v473_v19  ;;  %v525_v28 = vmul.f32 %v514_v20, %v514_v20  ;;  %v519_v53 = vmul.f32 0.5, %v473_v19  ;;  %v521_v55 = vmul.f32 0.5, %v514_v20 }
 0x107   : > { %v526_v29 = vmul.f32 %v522_v23, %v471_v15  ;;  %v528_v30 = vmul.f32 %v524_v24, %v512_v16 }
 0x108   : > { %v527_v31 = vmul.f32 %v523_v27, %v473_v19  ;;  %v529_v32 = vmul.f32 %v525_v28, %v514_v20 }
 0x109   : > { %v530_v33 = vmul.f32 0.044715, %v526_v29  ;;  %v532_v34 = vmul.f32 0.044715, %v528_v30 }
 0x10a   : > { %v531_v35 = vmul.f32 0.044715, %v527_v31  ;;  %v533_v36 = vmul.f32 0.044715, %v529_v32 }
 0x10b   : > { %v534_v37 = vadd.f32 %v530_v33, %v471_v15  ;;  %v536_v38 = vadd.f32 %v532_v34, %v512_v16 }
 0x10c   : > { %v535_v39 = vadd.f32 %v531_v35, %v473_v19  ;;  %v537_v40 = vadd.f32 %v533_v36, %v514_v20 }
 0x10d   : > { %v538_v41 = vmul.f32 0.7978846, %v534_v37  ;;  %v540_v42 = vmul.f32 0.7978846, %v536_v38 }
 0x10e   : > { %v539_v43 = vmul.f32 0.7978846, %v535_v39  ;;  %v541_v44 = vmul.f32 0.7978846, %v537_v40 }
 0x10f   : > { %1214 = vtanh.f32 %v538_v41 }
 0x110   : > { %1216 = vtanh.f32 %v540_v42 }
 0x111   : > { %1218 = vtanh.f32 %v539_v43 }
 0x112   : > { %1220 = vtanh.f32 %v541_v44 }
 0x119   : > { %v1215_v45 = vpop.eup %1214 }
 0x11a   : > { %v1217_v46 = vpop.eup %1216  ;;  %v546_v47 = vadd.f32 1.0, %v1215_v45 }
 0x11b   : > { %v1219_v48 = vpop.eup %1218  ;;  %v548_v50 = vadd.f32 1.0, %v1217_v46 }
 0x11c   : > { %v1221_v51 = vpop.eup %1220  ;;  %v547_v54 = vadd.f32 1.0, %v1219_v48  ;;  %v550_v57 = vmul.f32 %v546_v47, %v518_v49 }
 0x11d   : > { %v549_v56 = vadd.f32 1.0, %v1221_v51  ;;  %v552_v59 = vmul.f32 %v548_v50, %v520_v52 }
 0x11e   : > { %v551_v58 = vmul.f32 %v547_v54, %v519_v53  ;;  %v554_v63 = vpack.c.bf16 %v550_v57, %v550_v57 }
 0x11f   : > { %v553_v60 = vmul.f32 %v549_v56, %v521_v55  ;;  %v556_v0 = vpack.c.bf16 %v552_v59, %v552_v59 }
 0x120   : > { %v555_v61 = vpack.c.bf16 %v551_v58, %v551_v58 }
 0x121   : > { %v557_v62 = vpack.c.bf16 %v553_v60, %v553_v60 }
 0x122   : > { %853 = vmatprep.mubr.bf16.mxu0 %v555_v61 }
 0x123   : > { %893 = vmatprep.mubr.bf16.mxu1 %v557_v62  ;;  %854 = vmatmul.mubr.bf16.vlgmr.msra.gmra.mrb[4].mxu0 %v554_v63 }
 0x124   : > { %894 = vmatmul.mubr.bf16.vlgmr.msra.gmra.mrb[4].mxu1 %v556_v0 }
 0x1f6   : > { %v1066_v1 = vpop.f32.mrb[4].mxu0 }
 0x1f7   : > { %v1088_v2 = vpop.f32.mrb[4].mxu1  ;;  %v1067_v4 = vpop.f32.mrb[5].mxu0 }
 0x1f8   : > { %v1068_v5 = vadd.f32 %v1067_v4, %v1066_v1  ;;  %v1089_v6 = vpop.f32.mrb[5].mxu1  ;;  %v1069_v7 = vpop.f32.mrb[6].mxu0 }
 0x1f9   : > { %v1090_v8 = vadd.f32 %v1089_v6, %v1088_v2  ;;  %v1091_v9 = vpop.f32.mrb[6].mxu1  ;;  %v1070_v10 = vpop.f32.mrb[7].mxu0 }
 0x1fa   : > { %v856_v11 = vadd.f32 %v1068_v5, %v1013_v3  ;;  %v1092_v12 = vpop.f32.mrb[7].mxu1 }
 0x1fc   : > { %v896_v13 = vadd.f32 %v1090_v8, %v856_v11 }
 0x1fe   : > { %901 = vst [vmem:[%s215_s23] sm:$0xff] %v896_v13 }
 0x1ff   : > { %1235 = shalt.err (!%p1232_p3)
}
 0x200   : > { %s1236_s11 = scalar_lea.hbm %s1574_s30, 128  ;;  %s1240_s14 = scalar_lea.hbm %s1621_s5, 256 }
 0x201   : > { %p1237_p4 = scmp.ne.s32.totalorder %s1574_s30, %s1236_s11  ;;  %p1241_p9 = scmp.lt.u32.totalorder %s1574_s30, %s1621_s5 }
 0x202   : > { %p1242_p10 = scmp.lt.u32.totalorder %s1240_s14, %s1236_s11  ;;  %p1244_p12 = scmp.lt.u32.totalorder %s1236_s11, %s1574_s30 }
 0x203   : > { %p1238_p7 = pnand %p1237_p4, %p1356_p5 }
 0x204   : > { %p1243_p11 = por %p1242_p10, %p1241_p9 }
 0x205   : > { %p1239_p8 = pneg %p1238_p7 }
 0x206   : > { %p1245_p13 = por %p1244_p12, %p1243_p11 }
 0x208   : > { %p1246_p0 = pnand %p1245_p13, %p1239_p8 }
 0x20a   : > { %1249 = shalt.err (!%p1246_p0)
}
 0x20b   : > { %1094 = dma.vmem_to_hbm [thread:$0]  (%p1356_p5), %s1576_s25, 128, %s1574_s30, %s903_s6  }
 0x20c PF: > { %p1100_p1 = scmp.ge.s32.totalorder %s1284_s21, 2  ;;  %s928_s10 = sand.u32 1, %s1272_s18  }
 0x20d   : > { %s929_s23 = scalar_lea.sflag [#allocation3], %s928_s10 }
 0x20e   : > { %p1097_p2 = pnand %p1100_p1, %p1360_p6 }
 0x210   : > { %1267 = dma.done.wait (!%p1097_p2), %s929_s23, 128  }
 0x211   : > { %1269 = vsyncadd (!%p1097_p2), %s929_s23, 4294967168  ;;  %p15_p3 = scmp.ge.s32.totalorder %s1343_s24, 4   ;;  %s1624_s18 = smov %s1276_s19 }
 0x212   : > { %s1625_s19 = smov %s1280_s20  ;;  %s1626_s20 = smov %s1354_s27 }
 0x213   : > { %s1627_s21 = smov %s1343_s24  ;;  %17 = sbr.rel (!%p15_p3) target bundleno = 3 (0x3), region = 75 }
 0x21a   :  { %934 = vsyncpa [#allocation3], 1 }
 0x21b   :  { %936 = vsyncpa [#allocation3 + $0x1], 1 }

</bundles_post_ra>
